<compile_context>
chip_gen: v7x
topology: tpu7x:2x2x1
jax: 0.10.0
libtpu: 0.0.40
codegen_flags: <defaults>
</compile_context>

<pallas_src>
import functools

import jax
import jax.numpy as jnp
from jax.experimental import pallas as pl
from jax.experimental.pallas import tpu as pltpu

LN_EPS = 1e-5

# Conservative budget for the double-buffered feat/out tiles so the kernel fits
# v7x's 32 MiB scoped-VMEM default with headroom for weights + compiler scratch.
_VMEM_DATA_BUDGET = 20 * 1024 * 1024
_VMEM_LIMIT_BYTES = 32 * 1024 * 1024


def _round_up(x, n):
    return ((x + n - 1) // n) * n


def _reward_decoder_kernel(feat_ref, w1_ref, g1_ref, b1_ref,
                           w2_ref, g2_ref, b2_ref, wh_ref, bh_ref,
                           out_ref, *, h_real, h_pad):
    """One (tm, S*D) row tile -> (tm, C_pad) output tile."""

    def layernorm(x, gamma, beta):
        # x has zeros in the padded columns (padded weight columns are zero),
        # so sum/h_real is the exact mean over the real H columns; the variance
        # masks out the padded columns. gamma/beta are zero-padded, so padded
        # output columns stay exactly zero.
        inv_n = 1.0 / h_real
        mu = jnp.sum(x, axis=-1, keepdims=True) * inv_n
        d = x - mu
        if h_real != h_pad:
            mask = jax.lax.broadcasted_iota(jnp.int32, x.shape, 1) < h_real
            dsq = jnp.where(mask, d * d, 0.0)
        else:
            dsq = d * d
        var = jnp.sum(dsq, axis=-1, keepdims=True) * inv_n
        return d * jax.lax.rsqrt(var + LN_EPS) * gamma + beta

    # Lane-dense feat tile; the slot-sum is folded into w1 (tiled along rows).
    x = feat_ref[...].astype(jnp.float32)                               # (tm, S*D)

    h = jnp.dot(x, w1_ref[...], preferred_element_type=jnp.float32)    # (tm, Hp)
    h = jnp.maximum(layernorm(h, g1_ref[...], b1_ref[...]), 0.0)

    h = jnp.dot(h, w2_ref[...], preferred_element_type=jnp.float32)    # (tm, Hp)
    h = jnp.maximum(layernorm(h, g2_ref[...], b2_ref[...]), 0.0)

    out = jnp.dot(h, wh_ref[...], preferred_element_type=jnp.float32) + bh_ref[...]
    out_ref[...] = out.astype(out_ref.dtype)                            # (tm, Cp)


def _pad_last(a, n):
    return jnp.pad(a, [(0, 0)] * (a.ndim - 1) + [(0, n - a.shape[-1])])


def _pad_first(a, n):
    return jnp.pad(a, [(0, n - a.shape[0])] + [(0, 0)] * (a.ndim - 1))


def reward_decoder(feat, params, *, tm=1024):
    """feat: (..., S, D) float32.  Returns (..., num_classes) float32.

    params are the natural (unpadded) decoder parameters with Linear weights
    pre-transposed to (in, out):
        (w1 (D,H), g1 (1,H), b1 (1,H), w2 (H,H), g2 (1,H), b2 (1,H),
         wh (H,C), bh (1,C))
    """
    w1, g1, b1, w2, g2, b2, wh, bh = params
    *lead, S, D = feat.shape
    H = w1.shape[1]
    C = wh.shape[1]

    M = 1
    for d in lead:
        M *= int(d)
    SD = S * D
    H_pad = _round_up(H, 128)
    C_pad = _round_up(C, 128)

    # ---- lane-dense feat layout: fold the slot-sum into the first matmul ----
    feat2 = feat.reshape(M, SD)
    feat_itemsize = feat2.dtype.itemsize

    # ---- row tile: big by default, shrunk only if VMEM would get tight ------
    tm_eff = max(8, min(int(tm), _round_up(M, 8)))
    tm_eff = _round_up(tm_eff, 8)

    def _double_buffer_bytes(t):
        return 2 * t * SD * feat_itemsize + 2 * t * C_pad * 4

    while tm_eff > 8 and _double_buffer_bytes(tm_eff) > _VMEM_DATA_BUDGET:
        tm_eff = max(8, _round_up(tm_eff // 2, 8))

    n_tiles = pl.cdiv(M, tm_eff)
    if n_tiles > 1 and n_tiles % 2 != 0:
        n_tiles += 1  # even grid -> balanced across v7x's two TensorCores
    M_pad = n_tiles * tm_eff
    if M_pad != M:
        feat2 = jnp.pad(feat2, ((0, M_pad - M), (0, 0)))

    # ---- pad parameters: zero-padded columns keep the math exact ------------
    w1t = jnp.tile(w1, (S, 1))                              # (S*D, H): folds sum over slots
    w1p = _pad_last(w1t, H_pad)                             # (S*D, H_pad)
    g1p = _pad_last(g1, H_pad)                              # (1, H_pad)
    b1p = _pad_last(b1, H_pad)
    w2p = _pad_last(_pad_first(w2, H_pad), H_pad)           # (H_pad, H_pad)
    g2p = _pad_last(g2, H_pad)
    b2p = _pad_last(b2, H_pad)
    whp = _pad_last(_pad_first(wh, H_pad), C_pad)           # (H_pad, C_pad)
    bhp = _pad_last(bh, C_pad)                              # (1, C_pad)

    def full(shape):
        # whole-array block, constant block index across the grid (stays resident)
        return pl.BlockSpec(shape, lambda i: tuple(0 for _ in shape))

    kernel = functools.partial(_reward_decoder_kernel, h_real=H, h_pad=H_pad)

    out = pl.pallas_call(
        kernel,
        out_shape=jax.ShapeDtypeStruct((M_pad, C_pad), jnp.float32),
        grid_spec=pltpu.PrefetchScalarGridSpec(
            num_scalar_prefetch=0,
            grid=(n_tiles,),
            in_specs=[
                pl.BlockSpec((tm_eff, SD), lambda i: (i, 0)),   # feat row tile (lane-dense)
                full((SD, H_pad)),   # w1 tiled over slots
                full((1, H_pad)),    # ln1 gamma
                full((1, H_pad)),    # ln1 beta
                full((H_pad, H_pad)),  # w2
                full((1, H_pad)),    # ln2 gamma
                full((1, H_pad)),    # ln2 beta
                full((H_pad, C_pad)),  # head weight
                full((1, C_pad)),    # head bias
            ],
            out_specs=pl.BlockSpec((tm_eff, C_pad), lambda i: (i, 0)),
        ),
        compiler_params=pltpu.CompilerParams(
            dimension_semantics=("parallel",),
            vmem_limit_bytes=_VMEM_LIMIT_BYTES,
        ),
    )(feat2, w1p, g1p, b1p, w2p, g2p, b2p, whp, bhp)

    return out[:M, :C].reshape(tuple(lead) + (C,))


# ----------------------------- reference / params -----------------------------

def _layernorm_ref(x, gamma, beta):
    mu = jnp.mean(x, axis=-1, keepdims=True)
    var = jnp.mean((x - mu) ** 2, axis=-1, keepdims=True)
    return (x - mu) * jax.lax.rsqrt(var + LN_EPS) * gamma + beta


def reward_decoder_ref(feat, params):
    """Pure-JAX reference mirroring the PyTorch forward."""
    w1, g1, b1, w2, g2, b2, wh, bh = params
    x = feat.sum(axis=-2)
    h = x @ w1
    h = jnp.maximum(_layernorm_ref(h, g1, b1), 0.0)
    h = h @ w2
    h = jnp.maximum(_layernorm_ref(h, g2, b2), 0.0)
    return h @ wh + bh


def make_params(key, input_dim, hidden_dim, num_classes):
    """Deterministic synthetic parameters (PyTorch Linear weight is (out,in);
    we store the transposed (in,out) form for direct x @ W matmuls)."""
    k1, k2, k3, k4 = jax.random.split(key, 4)
    w1 = jax.random.normal(k1, (input_dim, hidden_dim), jnp.float32) * 0.05
    g1 = jnp.ones((1, hidden_dim), jnp.float32)
    b1 = jnp.zeros((1, hidden_dim), jnp.float32)
    w2 = jax.random.normal(k2, (hidden_dim, hidden_dim), jnp.float32) * 0.05
    g2 = jnp.ones((1, hidden_dim), jnp.float32)
    b2 = jnp.zeros((1, hidden_dim), jnp.float32)
    wh = jax.random.normal(k3, (hidden_dim, num_classes), jnp.float32) * 0.05
    bh = jax.random.normal(k4, (1, num_classes), jnp.float32) * 0.05
    return (w1, g1, b1, w2, g2, b2, wh, bh)


if __name__ == "__main__":
    # Module hyperparams (embedding_size is unused by the forward pass).
    num_classes = 16
    embedding_size = 32   # unused, kept for signature parity
    input_dim = 32
    hidden_dim = 32

    # feat: (batch, seq, slots, input_dim); sum is over the slots axis (dim=-2).
    batch, seq, slots = 2, 8, 4

    key = jax.random.PRNGKey(0)
    kf, kp = jax.random.split(key)
    feat = jax.random.normal(kf, (batch, seq, slots, input_dim), jnp.float32)
    params = make_params(kp, input_dim, hidden_dim, num_classes)

    out = reward_decoder(feat, params, tm=1024)
    out = jax.block_until_ready(out)

    ref = reward_decoder_ref(feat, params)
    assert out.shape == (batch, seq, num_classes)
    assert jnp.allclose(out, ref, atol=1e-4, rtol=1e-4), "mismatch vs reference"

    print("KERNEL_OK")
</pallas_src>

<mosaic_0001>
module attributes {stable_mosaic.version = 11 : i64} {
  func.func @_reward_decoder_kernel(%arg0: i32, %arg1: memref<16x128xf32, #tpu.memory_space<vmem>>, %arg2: memref<128x128xf32, #tpu.memory_space<vmem>>, %arg3: memref<1x128xf32, #tpu.memory_space<vmem>>, %arg4: memref<1x128xf32, #tpu.memory_space<vmem>>, %arg5: memref<128x128xf32, #tpu.memory_space<vmem>>, %arg6: memref<1x128xf32, #tpu.memory_space<vmem>>, %arg7: memref<1x128xf32, #tpu.memory_space<vmem>>, %arg8: memref<128x128xf32, #tpu.memory_space<vmem>>, %arg9: memref<1x128xf32, #tpu.memory_space<vmem>>, %arg10: memref<16x128xf32, #tpu.memory_space<vmem>>) attributes {dimension_semantics = [#tpu.dimension_semantics<parallel>], iteration_bounds = array<i64: 1>, scalar_prefetch = 0 : i64, scratch_operands = 0 : i64, tpu.core_type = #tpu.core_type<tc>, window_params = [{transform_indices = @transform_0, window_bounds = array<i64: 16, 128>}, {pipeline_mode = #tpu.pipeline_mode<synchronous>, transform_indices = @transform_1, window_bounds = array<i64: 128, 128>}, {pipeline_mode = #tpu.pipeline_mode<synchronous>, transform_indices = @transform_2, window_bounds = array<i64: 1, 128>}, {pipeline_mode = #tpu.pipeline_mode<synchronous>, transform_indices = @transform_3, window_bounds = array<i64: 1, 128>}, {pipeline_mode = #tpu.pipeline_mode<synchronous>, transform_indices = @transform_4, window_bounds = array<i64: 128, 128>}, {pipeline_mode = #tpu.pipeline_mode<synchronous>, transform_indices = @transform_5, window_bounds = array<i64: 1, 128>}, {pipeline_mode = #tpu.pipeline_mode<synchronous>, transform_indices = @transform_6, window_bounds = array<i64: 1, 128>}, {pipeline_mode = #tpu.pipeline_mode<synchronous>, transform_indices = @transform_7, window_bounds = array<i64: 128, 128>}, {pipeline_mode = #tpu.pipeline_mode<synchronous>, transform_indices = @transform_8, window_bounds = array<i64: 1, 128>}, {transform_indices = @transform_9, window_bounds = array<i64: 16, 128>}]} {
    %c0 = arith.constant 0 : index
    %c0_0 = arith.constant 0 : index
    %0 = vector.load %arg1[%c0, %c0_0] : memref<16x128xf32, #tpu.memory_space<vmem>>, vector<16x128xf32>
    %c0_1 = arith.constant 0 : index
    %c0_2 = arith.constant 0 : index
    %1 = vector.load %arg2[%c0_1, %c0_2] : memref<128x128xf32, #tpu.memory_space<vmem>>, vector<128x128xf32>
    %cst = arith.constant dense<0.000000e+00> : vector<16x128xf32>
    %2 = tpu.matmul %0, %1, %cst {dimension_numbers = #tpu.dot_dimension_numbers<[1], [0], [0], [1], [0, 0, 1, 1], [], []>} : vector<16x128xf32>, vector<128x128xf32>, vector<16x128xf32> -> vector<16x128xf32>
    %c0_3 = arith.constant 0 : index
    %c0_4 = arith.constant 0 : index
    %3 = vector.load %arg3[%c0_3, %c0_4] : memref<1x128xf32, #tpu.memory_space<vmem>>, vector<1x128xf32>
    %c0_5 = arith.constant 0 : index
    %c0_6 = arith.constant 0 : index
    %4 = vector.load %arg4[%c0_5, %c0_6] : memref<1x128xf32, #tpu.memory_space<vmem>>, vector<1x128xf32>
    %cst_7 = arith.constant dense<0.000000e+00> : vector<16xf32>
    %5 = vector.multi_reduction <add>, %2, %cst_7 [1] : vector<16x128xf32> to vector<16xf32>
    %6 = vector.shape_cast %5 : vector<16xf32> to vector<16x1xf32>
    %cst_8 = arith.constant 3.125000e-02 : f32
    %7 = vector.broadcast %cst_8 : f32 to vector<16x1xf32>
    %8 = arith.mulf %6, %7 : vector<16x1xf32>
    %9 = vector.broadcast %8 : vector<16x1xf32> to vector<16x128xf32>
    %10 = arith.subf %2, %9 : vector<16x128xf32>
    %11 = tpu.iota {dimensions = array<i32: 1>} : vector<16x128xi32>
    %c32_i32 = arith.constant 32 : i32
    %12 = vector.broadcast %c32_i32 : i32 to vector<16x128xi32>
    %13 = arith.cmpi slt, %11, %12 : vector<16x128xi32>
    %14 = arith.mulf %10, %10 : vector<16x128xf32>
    %cst_9 = arith.constant 0.000000e+00 : f32
    %15 = vector.broadcast %cst_9 : f32 to vector<16x128xf32>
    %16 = arith.select %13, %14, %15 : vector<16x128xi1>, vector<16x128xf32>
    %cst_10 = arith.constant dense<0.000000e+00> : vector<16xf32>
    %17 = vector.multi_reduction <add>, %16, %cst_10 [1] : vector<16x128xf32> to vector<16xf32>
    %18 = vector.shape_cast %17 : vector<16xf32> to vector<16x1xf32>
    %cst_11 = arith.constant 3.125000e-02 : f32
    %19 = vector.broadcast %cst_11 : f32 to vector<16x1xf32>
    %20 = arith.mulf %18, %19 : vector<16x1xf32>
    %cst_12 = arith.constant 9.99999974E-6 : f32
    %21 = vector.broadcast %cst_12 : f32 to vector<16x1xf32>
    %22 = arith.addf %20, %21 : vector<16x1xf32>
    %23 = math.rsqrt %22 : vector<16x1xf32>
    %24 = vector.broadcast %23 : vector<16x1xf32> to vector<16x128xf32>
    %25 = arith.mulf %10, %24 : vector<16x128xf32>
    %26 = vector.broadcast %3 : vector<1x128xf32> to vector<16x128xf32>
    %27 = arith.mulf %25, %26 : vector<16x128xf32>
    %28 = vector.broadcast %4 : vector<1x128xf32> to vector<16x128xf32>
    %29 = arith.addf %27, %28 : vector<16x128xf32>
    %cst_13 = arith.constant 0.000000e+00 : f32
    %30 = vector.broadcast %cst_13 : f32 to vector<16x128xf32>
    %31 = arith.maximumf %29, %30 : vector<16x128xf32>
    %c0_14 = arith.constant 0 : index
    %c0_15 = arith.constant 0 : index
    %32 = vector.load %arg5[%c0_14, %c0_15] : memref<128x128xf32, #tpu.memory_space<vmem>>, vector<128x128xf32>
    %cst_16 = arith.constant dense<0.000000e+00> : vector<16x128xf32>
    %33 = tpu.matmul %31, %32, %cst_16 {dimension_numbers = #tpu.dot_dimension_numbers<[1], [0], [0], [1], [0, 0, 1, 1], [], []>} : vector<16x128xf32>, vector<128x128xf32>, vector<16x128xf32> -> vector<16x128xf32>
    %c0_17 = arith.constant 0 : index
    %c0_18 = arith.constant 0 : index
    %34 = vector.load %arg6[%c0_17, %c0_18] : memref<1x128xf32, #tpu.memory_space<vmem>>, vector<1x128xf32>
    %c0_19 = arith.constant 0 : index
    %c0_20 = arith.constant 0 : index
    %35 = vector.load %arg7[%c0_19, %c0_20] : memref<1x128xf32, #tpu.memory_space<vmem>>, vector<1x128xf32>
    %cst_21 = arith.constant dense<0.000000e+00> : vector<16xf32>
    %36 = vector.multi_reduction <add>, %33, %cst_21 [1] : vector<16x128xf32> to vector<16xf32>
    %37 = vector.shape_cast %36 : vector<16xf32> to vector<16x1xf32>
    %cst_22 = arith.constant 3.125000e-02 : f32
    %38 = vector.broadcast %cst_22 : f32 to vector<16x1xf32>
    %39 = arith.mulf %37, %38 : vector<16x1xf32>
    %40 = vector.broadcast %39 : vector<16x1xf32> to vector<16x128xf32>
    %41 = arith.subf %33, %40 : vector<16x128xf32>
    %42 = tpu.iota {dimensions = array<i32: 1>} : vector<16x128xi32>
    %c32_i32_23 = arith.constant 32 : i32
    %43 = vector.broadcast %c32_i32_23 : i32 to vector<16x128xi32>
    %44 = arith.cmpi slt, %42, %43 : vector<16x128xi32>
    %45 = arith.mulf %41, %41 : vector<16x128xf32>
    %cst_24 = arith.constant 0.000000e+00 : f32
    %46 = vector.broadcast %cst_24 : f32 to vector<16x128xf32>
    %47 = arith.select %44, %45, %46 : vector<16x128xi1>, vector<16x128xf32>
    %cst_25 = arith.constant dense<0.000000e+00> : vector<16xf32>
    %48 = vector.multi_reduction <add>, %47, %cst_25 [1] : vector<16x128xf32> to vector<16xf32>
    %49 = vector.shape_cast %48 : vector<16xf32> to vector<16x1xf32>
    %cst_26 = arith.constant 3.125000e-02 : f32
    %50 = vector.broadcast %cst_26 : f32 to vector<16x1xf32>
    %51 = arith.mulf %49, %50 : vector<16x1xf32>
    %cst_27 = arith.constant 9.99999974E-6 : f32
    %52 = vector.broadcast %cst_27 : f32 to vector<16x1xf32>
    %53 = arith.addf %51, %52 : vector<16x1xf32>
    %54 = math.rsqrt %53 : vector<16x1xf32>
    %55 = vector.broadcast %54 : vector<16x1xf32> to vector<16x128xf32>
    %56 = arith.mulf %41, %55 : vector<16x128xf32>
    %57 = vector.broadcast %34 : vector<1x128xf32> to vector<16x128xf32>
    %58 = arith.mulf %56, %57 : vector<16x128xf32>
    %59 = vector.broadcast %35 : vector<1x128xf32> to vector<16x128xf32>
    %60 = arith.addf %58, %59 : vector<16x128xf32>
    %cst_28 = arith.constant 0.000000e+00 : f32
    %61 = vector.broadcast %cst_28 : f32 to vector<16x128xf32>
    %62 = arith.maximumf %60, %61 : vector<16x128xf32>
    %c0_29 = arith.constant 0 : index
    %c0_30 = arith.constant 0 : index
    %63 = vector.load %arg8[%c0_29, %c0_30] : memref<128x128xf32, #tpu.memory_space<vmem>>, vector<128x128xf32>
    %cst_31 = arith.constant dense<0.000000e+00> : vector<16x128xf32>
    %64 = tpu.matmul %62, %63, %cst_31 {dimension_numbers = #tpu.dot_dimension_numbers<[1], [0], [0], [1], [0, 0, 1, 1], [], []>} : vector<16x128xf32>, vector<128x128xf32>, vector<16x128xf32> -> vector<16x128xf32>
    %c0_32 = arith.constant 0 : index
    %c0_33 = arith.constant 0 : index
    %65 = vector.load %arg9[%c0_32, %c0_33] : memref<1x128xf32, #tpu.memory_space<vmem>>, vector<1x128xf32>
    %66 = vector.broadcast %65 : vector<1x128xf32> to vector<16x128xf32>
    %67 = arith.addf %64, %66 : vector<16x128xf32>
    %c0_34 = arith.constant 0 : index
    %c0_35 = arith.constant 0 : index
    %68 = vector.load %arg10[%c0_34, %c0_35] : memref<16x128xf32, #tpu.memory_space<vmem>>, vector<16x128xf32>
    tpu.vector_store %arg10[%c0_34, %c0_35], %67 {strides = array<i32>} : memref<16x128xf32, #tpu.memory_space<vmem>>, vector<16x128xf32>,
    return
  }
  func.func @transform_0(%arg0: i32) -> (i32, i32) {
    %c0_i32 = arith.constant 0 : i32
    %c0_i32_0 = arith.constant 0 : i32
    return %arg0, %c0_i32 : i32, i32
  }
  func.func @transform_1(%arg0: i32) -> (i32, i32) {
    %c0_i32 = arith.constant 0 : i32
    %c0_i32_0 = arith.constant 0 : i32
    %c0_i32_1 = arith.constant 0 : i32
    return %c0_i32, %c0_i32_0 : i32, i32
  }
  func.func @transform_2(%arg0: i32) -> (i32, i32) {
    %c0_i32 = arith.constant 0 : i32
    %c0_i32_0 = arith.constant 0 : i32
    %c0_i32_1 = arith.constant 0 : i32
    return %c0_i32, %c0_i32_0 : i32, i32
  }
  func.func @transform_3(%arg0: i32) -> (i32, i32) {
    %c0_i32 = arith.constant 0 : i32
    %c0_i32_0 = arith.constant 0 : i32
    %c0_i32_1 = arith.constant 0 : i32
    return %c0_i32, %c0_i32_0 : i32, i32
  }
  func.func @transform_4(%arg0: i32) -> (i32, i32) {
    %c0_i32 = arith.constant 0 : i32
    %c0_i32_0 = arith.constant 0 : i32
    %c0_i32_1 = arith.constant 0 : i32
    return %c0_i32, %c0_i32_0 : i32, i32
  }
  func.func @transform_5(%arg0: i32) -> (i32, i32) {
    %c0_i32 = arith.constant 0 : i32
    %c0_i32_0 = arith.constant 0 : i32
    %c0_i32_1 = arith.constant 0 : i32
    return %c0_i32, %c0_i32_0 : i32, i32
  }
  func.func @transform_6(%arg0: i32) -> (i32, i32) {
    %c0_i32 = arith.constant 0 : i32
    %c0_i32_0 = arith.constant 0 : i32
    %c0_i32_1 = arith.constant 0 : i32
    return %c0_i32, %c0_i32_0 : i32, i32
  }
  func.func @transform_7(%arg0: i32) -> (i32, i32) {
    %c0_i32 = arith.constant 0 : i32
    %c0_i32_0 = arith.constant 0 : i32
    %c0_i32_1 = arith.constant 0 : i32
    return %c0_i32, %c0_i32_0 : i32, i32
  }
  func.func @transform_8(%arg0: i32) -> (i32, i32) {
    %c0_i32 = arith.constant 0 : i32
    %c0_i32_0 = arith.constant 0 : i32
    %c0_i32_1 = arith.constant 0 : i32
    return %c0_i32, %c0_i32_0 : i32, i32
  }
  func.func @transform_9(%arg0: i32) -> (i32, i32) {
    %c0_i32 = arith.constant 0 : i32
    %c0_i32_0 = arith.constant 0 : i32
    return %arg0, %c0_i32 : i32, i32
  }
}

</mosaic_0001>

<bundles_post_ra>
// kernel: tpu_custom_call.1
= control target key start
LH: loop header
LB: loop body
LE: loop exit
PB: predicated region body
PF: predicated region fallthrough
CT: control target
= control target key end

     0   :  { %14 = vsyncpa [#allocation3], 0  ;;  %s1047_s0 = inlined_call_operand.hbm [shape: f32[16,128], index: 0, kind: input, shape index: {}]   ;;  %s1048_s1 = inlined_call_operand.hbm [shape: f32[128,128], index: 1, kind: input, shape index: {}]   ;;  %s1049_s2 = inlined_call_operand.vmem [shape: f32[1,128], index: 2, kind: input, shape index: {}]   ;;  %s1050_s3 = inlined_call_operand.vmem [shape: f32[1,128], index: 3, kind: input, shape index: {}]   ;;  %s1051_s4 = inlined_call_operand.hbm [shape: f32[128,128], index: 4, kind: input, shape index: {}]   ;;  %s1052_s5 = inlined_call_operand.vmem [shape: f32[1,128], index: 5, kind: input, shape index: {}]   ;;  %s1053_s6 = inlined_call_operand.vmem [shape: f32[1,128], index: 6, kind: input, shape index: {}]   ;;  %s1054_s7 = inlined_call_operand.hbm [shape: f32[128,128], index: 7, kind: input, shape index: {}]   ;;  %s1055_s8 = inlined_call_operand.vmem [shape: f32[1,128], index: 8, kind: input, shape index: {}]   ;;  %s1056_s9 = inlined_call_operand.hbm [shape: f32[16,128], index: 9, kind: output, shape index: {}]  }
   0x1   :  { %15 = vsyncpa [#allocation6], 0 }
   0x2   :  { %16 = vsyncpa [#allocation9], 0 }
   0x3   :  { %17 = vsyncpa [#allocation4], 0  ;;  %s875_s30 = smov [#allocation5]   ;;  %s876_s11 = smov [#allocation2]  }
   0x4   :  { %s35_s10 = sshll.u32 %s875_s30, 4  ;;  %s23_s12 = sshll.u32 %s876_s11, 4  ;;  %s36_s10 = int_to_ptr.vmem [resolvable:$true] %s35_s10  ;;  %s932_s12 = int_to_ptr.vmem [resolvable:$true] %s23_s12 }
   0x5   :  { %s757_s15 = scalar_lea.hbm %s1048_s1, 2048 }
   0x6   :  { %p758_p0 = scmp.ne.s32.totalorder %s1048_s1, %s757_s15  ;;  %p761_p1 = scmp.lt.u32.totalorder %s757_s15, %s1048_s1 }
   0x8   :  { %p763_p2 = pnand %p761_p1, %p758_p0 }
   0xa   :  { %766 = shalt.err (!%p763_p2)
}
   0xb   :  { %s767_s20 = scalar_lea.vmem %s36_s10, 2048  ;;  %p772_p4 = scmp.lt.s32.totalorder %s36_s10, %s36_s10 }
   0xc   :  { %p768_p3 = scmp.ne.s32.totalorder %s36_s10, %s767_s20  ;;  %p773_p5 = scmp.lt.s32.totalorder %s767_s20, %s767_s20 }
   0xe   :  { %p774_p6 = por %p773_p5, %p772_p4 }
  0x10   :  { %p775_p7 = pnand %p774_p6, %p768_p3 }
  0x12   :  { %778 = shalt.err (!%p775_p7)
}
  0x13   :  { %s877_s21 = smov 128   ;;  %s878_s22 = smov 8  }
  0x14   :  { %41 = dma.hbm_to_vmem [thread:$0]  %s1048_s1, 2048, %s36_s10, [#allocation6], %s877_s21, %s877_s21, %s878_s22  }
  0x15   :  { %s779_s27 = scalar_lea.hbm %s1047_s0, 256 }
  0x16   :  { %p780_p8 = scmp.ne.s32.totalorder %s1047_s0, %s779_s27  ;;  %p783_p9 = scmp.lt.u32.totalorder %s779_s27, %s1047_s0 }
  0x18   :  { %p785_p10 = pnand %p783_p9, %p780_p8 }
  0x1a   :  { %788 = shalt.err (!%p785_p10)
}
  0x1b   :  { %s789_s13 = scalar_lea.vmem %s932_s12, 256  ;;  %p794_p12 = scmp.lt.s32.totalorder %s932_s12, %s932_s12 }
  0x1c   :  { %p790_p11 = scmp.ne.s32.totalorder %s932_s12, %s789_s13  ;;  %p795_p13 = scmp.lt.s32.totalorder %s789_s13, %s789_s13 }
  0x1e   :  { %p796_p0 = por %p795_p13, %p794_p12 }
  0x20   :  { %p797_p1 = pnand %p796_p0, %p790_p11 }
  0x22   :  { %800 = shalt.err (!%p797_p1)
}
  0x23   :  { %29 = dma.hbm_to_vmem [thread:$0]  %s1047_s0, 256, %s932_s12, [#allocation3], %s877_s21, %s877_s21, %s878_s22  }
  0x24   :  { %s879_s14 = smov [#allocation7]   ;;  %s880_s16 = smov [#allocation8]  }
  0x25   :  { %s51_s15 = sshll.u32 %s879_s14, 4  ;;  %s67_s17 = sshll.u32 %s880_s16, 4  ;;  %s52_s15 = int_to_ptr.vmem [resolvable:$true] %s51_s15  ;;  %s969_s17 = int_to_ptr.vmem [resolvable:$true] %s67_s17 }
  0x26   :  { %s801_s20 = scalar_lea.hbm %s1051_s4, 2048 }
  0x27   :  { %p802_p2 = scmp.ne.s32.totalorder %s1051_s4, %s801_s20  ;;  %p805_p3 = scmp.lt.u32.totalorder %s801_s20, %s1051_s4 }
  0x29   :  { %p807_p4 = pnand %p805_p3, %p802_p2 }
  0x2b   :  { %810 = shalt.err (!%p807_p4)
}
  0x2c   :  { %s811_s0 = scalar_lea.vmem %s52_s15, 2048  ;;  %p816_p6 = scmp.lt.s32.totalorder %s52_s15, %s52_s15 }
  0x2d   :  { %p812_p5 = scmp.ne.s32.totalorder %s52_s15, %s811_s0  ;;  %p817_p7 = scmp.lt.s32.totalorder %s811_s0, %s811_s0 }
  0x2f   :  { %p818_p8 = por %p817_p7, %p816_p6 }
  0x31   :  { %p819_p9 = pnand %p818_p8, %p812_p5 }
  0x33   :  { %822 = shalt.err (!%p819_p9)
}
  0x34   :  { %57 = dma.hbm_to_vmem [thread:$0]  %s1051_s4, 2048, %s52_s15, [#allocation6], %s877_s21, %s877_s21, %s878_s22  }
  0x35   :  { %s823_s30 = scalar_lea.hbm %s1054_s7, 2048 }
  0x36   :  { %p824_p10 = scmp.ne.s32.totalorder %s1054_s7, %s823_s30  ;;  %p827_p11 = scmp.lt.u32.totalorder %s823_s30, %s1054_s7 }
  0x38   :  { %p829_p12 = pnand %p827_p11, %p824_p10 }
  0x3a   :  { %832 = shalt.err (!%p829_p12)
}
  0x3b   :  { %s833_s14 = scalar_lea.vmem %s969_s17, 2048  ;;  %p838_p0 = scmp.lt.s32.totalorder %s969_s17, %s969_s17 }
  0x3c   :  { %p834_p13 = scmp.ne.s32.totalorder %s969_s17, %s833_s14  ;;  %p839_p1 = scmp.lt.s32.totalorder %s833_s14, %s833_s14 }
  0x3e   :  { %p840_p2 = por %p839_p1, %p838_p0 }
  0x40   :  { %p841_p3 = pnand %p840_p2, %p834_p13 }
  0x42   :  { %844 = shalt.err (!%p841_p3)
}
  0x43   :  { %73 = dma.hbm_to_vmem [thread:$0]  %s1054_s7, 2048, %s969_s17, [#allocation9], %s877_s21, %s877_s21, %s878_s22  }
  0x44   :  { %867 = dma.done.wait [#allocation3], 256  }
  0x45   :  { %868 = vsyncadd [#allocation3], 4294967040 }
  0x46   :  { %869 = dma.done.wait [#allocation6], 4096  }
  0x47   :  { %870 = vsyncadd [#allocation6], 4294963200 }
  0x48   :  { %871 = dma.done.wait [#allocation9], 2048  }
  0x49   :  { %872 = vsyncadd [#allocation9], 4294965248  ;;  %v90_v0 = vld [vmem:[#allocation5] sm:$0xff]  ;;  %v91_v1 = vld [vmem:[#allocation5 + $0x8] sm:$0xff]  ;;  %v191_v34 = vlaneseq }
  0x4a   :  { %v92_v2 = vld [vmem:[#allocation5 + $0x10] sm:$0xff]  ;;  %v646_v3 = vpack.c.bf16 %v91_v1, %v90_v0  ;;  %v93_v4 = vld [vmem:[#allocation5 + $0x18] sm:$0xff]  ;;  %v94_v6 = vld [vmem:[#allocation5 + $0x20] sm:$0xff] }
  0x4b   :  { %v650_v5 = vpack.c.bf16 %v93_v4, %v92_v2  ;;  %v95_v7 = vld [vmem:[#allocation5 + $0x28] sm:$0xff]  ;;  %v88_v9 = vld [vmem:[#allocation2] sm:$0xff]  ;;  %v97_v11 = vld [vmem:[#allocation5 + $0x38] sm:$0xff]  ;;  %v1006_v36 = vand.u32 127, %v191_v34 }
  0x4c   :  { %647 = vmatprep.subr.bf16.mxu0 %v646_v3  ;;  %v654_v8 = vpack.c.bf16 %v95_v7, %v94_v6  ;;  %v96_v10 = vld [vmem:[#allocation5 + $0x30] sm:$0xff]  ;;  %573 = vmatprep.mubr.f32.mxu0 %v88_v9  ;;  %v98_v13 = vld [vmem:[#allocation5 + $0x40] sm:$0xff]  ;;  %v99_v14 = vld [vmem:[#allocation5 + $0x48] sm:$0xff] }
  0x4d   :  { %649 = vmatpush3.bf16.msra.mxu0 %v646_v3  ;;  %v658_v12 = vpack.c.bf16 %v97_v11, %v96_v10  ;;  %v662_v15 = vpack.c.bf16 %v99_v14, %v98_v13  ;;  %v100_v16 = vld [vmem:[#allocation5 + $0x50] sm:$0xff]  ;;  %v101_v17 = vld [vmem:[#allocation5 + $0x58] sm:$0xff]  ;;  %v102_v19 = vld [vmem:[#allocation5 + $0x60] sm:$0xff]  ;;  %vm193_vm0 = vcmp.lt.s32.totalorder %v1006_v36, 32 }
  0x4e   :  { %651 = vmatprep.subr.bf16.mxu0 %v650_v5  ;;  %v666_v18 = vpack.c.bf16 %v101_v17, %v100_v16  ;;  %v103_v20 = vld [vmem:[#allocation5 + $0x68] sm:$0xff]  ;;  %v104_v22 = vld [vmem:[#allocation5 + $0x70] sm:$0xff]  ;;  %v105_v23 = vld [vmem:[#allocation5 + $0x78] sm:$0xff] }
  0x4f   :  { %v670_v21 = vpack.c.bf16 %v103_v20, %v102_v19  ;;  %v674_v24 = vpack.c.bf16 %v105_v23, %v104_v22  ;;  %v89_v25 = vld [vmem:[#allocation2 + $0x8] sm:$0xff]  ;;  %v228_v28 = vld [vmem:[#allocation7] sm:$0xff]  ;;  %v229_v29 = vld [vmem:[#allocation7 + $0x8] sm:$0xff] }
  0x50   :  { %v230_v30 = vld [vmem:[#allocation7 + $0x10] sm:$0xff]  ;;  %v678_v31 = vpack.c.bf16 %v229_v29, %v228_v28  ;;  %v231_v32 = vld [vmem:[#allocation7 + $0x18] sm:$0xff]  ;;  %v232_v46 = vld [vmem:[#allocation7 + $0x20] sm:$0xff] }
  0x51   :  { %653 = vmatpush3.bf16.msra.mxu0 %v650_v5  ;;  %v682_v33 = vpack.c.bf16 %v231_v32, %v230_v30  ;;  %v233_v47 = vld [vmem:[#allocation7 + $0x28] sm:$0xff]  ;;  %v234_v49 = vld [vmem:[#allocation7 + $0x30] sm:$0xff]  ;;  %v235_v50 = vld [vmem:[#allocation7 + $0x38] sm:$0xff] }
  0x52   :  { %655 = vmatprep.subr.bf16.mxu0 %v654_v8  ;;  %679 = vmatprep.subr.bf16.mxu1 %v678_v31  ;;  %v686_v48 = vpack.c.bf16 %v233_v47, %v232_v46  ;;  %v690_v51 = vpack.c.bf16 %v235_v50, %v234_v49  ;;  %v236_v52 = vld [vmem:[#allocation7 + $0x40] sm:$0xff]  ;;  %v237_v53 = vld [vmem:[#allocation7 + $0x48] sm:$0xff]  ;;  %v238_v54 = vld [vmem:[#allocation7 + $0x50] sm:$0xff] }
  0x53   :  { %681 = vmatpush3.bf16.msra.mxu1 %v678_v31  ;;  %v694_v55 = vpack.c.bf16 %v237_v53, %v236_v52  ;;  %v239_v56 = vld [vmem:[#allocation7 + $0x58] sm:$0xff]  ;;  %v240_v58 = vld [vmem:[#allocation7 + $0x60] sm:$0xff]  ;;  %v241_v59 = vld [vmem:[#allocation7 + $0x68] sm:$0xff] }
  0x54   :  { %683 = vmatprep.subr.bf16.mxu1 %v682_v33  ;;  %v698_v57 = vpack.c.bf16 %v239_v56, %v238_v54  ;;  %v702_v60 = vpack.c.bf16 %v241_v59, %v240_v58  ;;  %v242_v61 = vld [vmem:[#allocation7 + $0x70] sm:$0xff]  ;;  %v243_v62 = vld [vmem:[#allocation7 + $0x78] sm:$0xff]  ;;  %v363_v20 = vld [vmem:[#allocation8] sm:$0xff] }
  0x55   :  { %657 = vmatpush3.bf16.msra.mxu0 %v654_v8  ;;  %v706_v63 = vpack.c.bf16 %v243_v62, %v242_v61  ;;  %v482_v7 = vld [vmem:[%s1049_s2] ss:$0 sm:$0xff]  ;;  %v374_v47 = vld [vmem:[#allocation8 + $0x58] sm:$0xff]  ;;  %v375_v36 = vld [vmem:[#allocation8 + $0x60] sm:$0xff] }
  0x56   :  { %659 = vmatprep.subr.bf16.mxu0 %v658_v12  ;;  %v483_v9 = vld [vmem:[%s1050_s3] ss:$0 sm:$0xff]  ;;  %v376_v49 = vld [vmem:[#allocation8 + $0x68] sm:$0xff]  ;;  %v378_v52 = vld [vmem:[#allocation8 + $0x78] sm:$0xff] }
  0x57   :  { %685 = vmatpush3.bf16.msra.mxu1 %v682_v33  ;;  %v365_v22 = vld [vmem:[#allocation8 + $0x10] sm:$0xff]  ;;  %v734_v50 = vpack.c.bf16 %v376_v49, %v375_v36 }
  0x58   :  { %687 = vmatprep.subr.bf16.mxu1 %v686_v48  ;;  %v484_v61 = vld [vmem:[%s1052_s5] ss:$0 sm:$0xff]  ;;  %s881_s5 = smov [#allocation10]  }
  0x59   :  { %661 = vmatpush3.bf16.msra.mxu0 %v658_v12  ;;  %s468_s25 = sshll.u32 %s881_s5, 4  ;;  %s469_s25 = int_to_ptr.vmem [resolvable:$true] %s468_s25 }
  0x5a   :  { %663 = vmatprep.subr.bf16.mxu0 %v662_v15  ;;  %p850_p5 = scmp.lt.s32.totalorder %s469_s25, %s469_s25 }
  0x5b   :  { %689 = vmatpush3.bf16.msra.mxu1 %v686_v48 }
  0x5c   :  { %691 = vmatprep.subr.bf16.mxu1 %v690_v51 }
  0x5d   :  { %665 = vmatpush3.bf16.msra.mxu0 %v662_v15 }
  0x5e   :  { %667 = vmatprep.subr.bf16.mxu0 %v666_v18 }
  0x5f   :  { %693 = vmatpush3.bf16.msra.mxu1 %v690_v51  ;;  %v377_v51 = vld [vmem:[#allocation8 + $0x70] sm:$0xff] }
  0x60   :  { %695 = vmatprep.subr.bf16.mxu1 %v694_v55  ;;  %v738_v53 = vpack.c.bf16 %v378_v52, %v377_v51 }
  0x61   :  { %669 = vmatpush3.bf16.msra.mxu0 %v666_v18 }
  0x62   :  { %671 = vmatprep.subr.bf16.mxu0 %v670_v21 }
  0x63   :  { %697 = vmatpush3.bf16.msra.mxu1 %v694_v55 }
  0x64   :  { %699 = vmatprep.subr.bf16.mxu1 %v698_v57 }
  0x65   :  { %673 = vmatpush3.bf16.msra.mxu0 %v670_v21  ;;  %v364_v21 = vld [vmem:[#allocation8 + $0x8] sm:$0xff] }
  0x66   :  { %675 = vmatprep.subr.bf16.mxu0 %v674_v24  ;;  %v710_v23 = vpack.c.bf16 %v364_v21, %v363_v20 }
  0x67   :  { %701 = vmatpush3.bf16.msra.mxu1 %v698_v57 }
  0x68   :  { %703 = vmatprep.subr.bf16.mxu1 %v702_v60 }
  0x69   :  { %677 = vmatpush3.bf16.msra.mxu0 %v674_v24  ;;  %v366_v24 = vld [vmem:[#allocation8 + $0x18] sm:$0xff] }
  0x6a   :  { %711 = vmatprep.subr.bf16.mxu0 %v710_v23 }
  0x6b   :  { %705 = vmatpush3.bf16.msra.mxu1 %v702_v60 }
  0x6c   :  { %574 = vmatmul.mubr.f32.vlgmr.msra.gmra.mrb[0].mxu0 %v89_v25  ;;  %707 = vmatprep.subr.bf16.mxu1 %v706_v63  ;;  %v714_v25 = vpack.c.bf16 %v366_v24, %v365_v22 }
  0x6d   :  { %713 = vmatpush3.bf16.msra.mxu0 %v710_v23 }
  0x6e   :  { %715 = vmatprep.subr.bf16.mxu0 %v714_v25 }
  0x6f   :  { %709 = vmatpush3.bf16.msra.mxu1 %v706_v63 }
  0x71   :  { %717 = vmatpush3.bf16.msra.mxu0 %v714_v25 }
 0x13f   :  { %v575_v26 = vpop.f32.mrb[0].mxu0 }
 0x140   :  { %v172_v27 = vpop.f32.mrb[1].mxu0 }
 0x141   :  { %183 = vadd.xlane.f32.xlu0 %v172_v27 }
 0x145   :  { %185 = vadd.xlane.f32.xlu0 %v575_v26 }
 0x1ce   :  { %v184_v35 = vpop.xlane.xlu0 %183 }
 0x1cf   :  { %v187_v37 = vmul.f32 0.03125, %v184_v35 }
 0x1d1   :  { %v189_v38 = vsub.f32 %v172_v27, %v187_v37  ;;  %v367_v37 = vld [vmem:[#allocation8 + $0x20] sm:$0xff] }
 0x1d2   :  { %v186_v39 = vpop.xlane.xlu0 %185 }
 0x1d3   :  { %v188_v40 = vmul.f32 0.03125, %v186_v39  ;;  %v194_v41 = vmul.f32 %v189_v38, %v189_v38 }
 0x1d5   :  { %v190_v42 = vsub.f32 %v575_v26, %v188_v40  ;;  %v196_v43 = vsel %vm193_vm0, %v194_v41, 0.0  ;;  %v369_v40 = vld [vmem:[#allocation8 + $0x30] sm:$0xff]  ;;  %v370_v41 = vld [vmem:[#allocation8 + $0x38] sm:$0xff] }
 0x1d6   :  { %198 = vadd.xlane.f32.xlu1 %v196_v43  ;;  %v371_v43 = vld [vmem:[#allocation8 + $0x40] sm:$0xff] }
 0x1d7   :  { %v195_v44 = vmul.f32 %v190_v42, %v190_v42 }
 0x1d9   :  { %v197_v45 = vsel %vm193_vm0, %v195_v44, 0.0  ;;  %v372_v44 = vld [vmem:[#allocation8 + $0x48] sm:$0xff] }
 0x1da   :  { %200 = vadd.xlane.f32.xlu1 %v197_v45  ;;  %v373_v45 = vld [vmem:[#allocation8 + $0x50] sm:$0xff]  ;;  %v726_v46 = vpack.c.bf16 %v372_v44, %v371_v43 }
 0x1db   :  { %v730_v48 = vpack.c.bf16 %v374_v47, %v373_v45 }
 0x263   :  { %v199_v0 = vpop.xlane.xlu1 %198 }
 0x264   :  { %v202_v1 = vmul.f32 0.03125, %v199_v0  ;;  %v485_v0 = vld [vmem:[%s1053_s6] ss:$0 sm:$0xff]  ;;  %s845_s6 = scalar_lea.vmem %s469_s25, 256 }
 0x265   :  { %p846_p4 = scmp.ne.s32.totalorder %s469_s25, %s845_s6  ;;  %p851_p6 = scmp.lt.s32.totalorder %s845_s6, %s845_s6 }
 0x266   :  { %v204_v2 = vadd.f32 1e-05, %v202_v1 }
 0x267   :  { %v201_v3 = vpop.xlane.xlu1 %200  ;;  %p852_p7 = por %p851_p6, %p850_p5 }
 0x268   :  { %749 = vrsqrt.f32 %v204_v2  ;;  %v203_v4 = vmul.f32 0.03125, %v201_v3 }
 0x269   :  { %p853_p8 = pnand %p852_p7, %p846_p4 }
 0x26a   :  { %v205_v5 = vadd.f32 1e-05, %v203_v4 }
 0x26c   :  { %751 = vrsqrt.f32 %v205_v5 }
 0x272   :  { %v750_v6 = vpop.eup %749 }
 0x273   :  { %v208_v8 = vmul.f32 %v750_v6, %v189_v38  ;;  %v368_v38 = vld [vmem:[#allocation8 + $0x28] sm:$0xff] }
 0x274   :  { %v718_v39 = vpack.c.bf16 %v368_v38, %v367_v37 }
 0x275   :  { %v216_v10 = vmul.f32 %v482_v7, %v208_v8  ;;  %v486_v8 = vld [vmem:[%s1055_s8] ss:$0 sm:$0xff] }
 0x276   :  { %v752_v11 = vpop.eup %751  ;;  %719 = vmatprep.subr.bf16.mxu0 %v718_v39 }
 0x277   :  { %v209_v12 = vmul.f32 %v752_v11, %v190_v42  ;;  %v224_v13 = vadd.f32 %v483_v9, %v216_v10  ;;  %721 = vmatpush3.bf16.msra.mxu0 %v718_v39  ;;  %v722_v42 = vpack.c.bf16 %v370_v41, %v369_v40 }
 0x279   :  { %v217_v14 = vmul.f32 %v482_v7, %v209_v12  ;;  %v226_v15 = vmax.f32 %v224_v13, 0.0  ;;  %723 = vmatprep.subr.bf16.mxu0 %v722_v42 }
 0x27b   :  { %v225_v16 = vadd.f32 %v483_v9, %v217_v14  ;;  %608 = vmatprep.mubr.f32.mxu1 %v226_v15  ;;  %725 = vmatpush3.bf16.msra.mxu0 %v722_v42 }
 0x27c   :  { %727 = vmatprep.subr.bf16.mxu0 %v726_v46 }
 0x27d   :  { %v227_v17 = vmax.f32 %v225_v16, 0.0 }
 0x27f   :  { %609 = vmatmul.mubr.f32.vlgmr.msra.gmra.mrb[0].mxu1 %v227_v17  ;;  %729 = vmatpush3.bf16.msra.mxu0 %v726_v46 }
 0x280   :  { %731 = vmatprep.subr.bf16.mxu0 %v730_v48 }
 0x283   :  { %733 = vmatpush3.bf16.msra.mxu0 %v730_v48 }
 0x284   :  { %735 = vmatprep.subr.bf16.mxu0 %v734_v50 }
 0x287   :  { %737 = vmatpush3.bf16.msra.mxu0 %v734_v50 }
 0x288   :  { %739 = vmatprep.subr.bf16.mxu0 %v738_v53 }
 0x28b   :  { %741 = vmatpush3.bf16.msra.mxu0 %v738_v53 }
 0x352   :  { %v610_v18 = vpop.f32.mrb[0].mxu1 }
 0x353   :  { %323 = vadd.xlane.f32.xlu1 %v610_v18  ;;  %v310_v19 = vpop.f32.mrb[1].mxu1 }
 0x354   :  { %321 = vadd.xlane.f32.xlu0 %v310_v19 }
 0x3e0   :  { %v324_v26 = vpop.xlane.xlu1 %323 }
 0x3e1   :  { %v326_v27 = vmul.f32 0.03125, %v324_v26  ;;  %v322_v28 = vpop.xlane.xlu0 %321 }
 0x3e2   :  { %v325_v29 = vmul.f32 0.03125, %v322_v28 }
 0x3e3   :  { %v328_v30 = vsub.f32 %v610_v18, %v326_v27 }
 0x3e4   :  { %v327_v31 = vsub.f32 %v310_v19, %v325_v29 }
 0x3e5   :  { %v330_v32 = vmul.f32 %v328_v30, %v328_v30 }
 0x3e6   :  { %v329_v33 = vmul.f32 %v327_v31, %v327_v31 }
 0x3e7   :  { %v332_v34 = vsel %vm193_vm0, %v330_v32, 0.0 }
 0x3e8   :  { %335 = vadd.xlane.f32.xlu1 %v332_v34  ;;  %v331_v35 = vsel %vm193_vm0, %v329_v33, 0.0 }
 0x3e9   :  { %333 = vadd.xlane.f32.xlu0 %v331_v35 }
 0x475   :  { %v336_v54 = vpop.xlane.xlu1 %335 }
 0x476   :  { %v338_v55 = vmul.f32 0.03125, %v336_v54  ;;  %v334_v56 = vpop.xlane.xlu0 %333 }
 0x477   :  { %v337_v57 = vmul.f32 0.03125, %v334_v56 }
 0x478   :  { %v340_v58 = vadd.f32 1e-05, %v338_v55 }
 0x479   :  { %v339_v59 = vadd.f32 1e-05, %v337_v57 }
 0x47a   :  { %753 = vrsqrt.f32 %v340_v58 }
 0x47b   :  { %755 = vrsqrt.f32 %v339_v59 }
 0x484   :  { %v754_v60 = vpop.eup %753 }
 0x485   :  { %v756_v62 = vpop.eup %755  ;;  %v344_v63 = vmul.f32 %v754_v60, %v328_v30 }
 0x486   :  { %v343_v1 = vmul.f32 %v756_v62, %v327_v31 }
 0x487   :  { %v352_v2 = vmul.f32 %v484_v61, %v344_v63 }
 0x488   :  { %v351_v3 = vmul.f32 %v484_v61, %v343_v1 }
 0x489   :  { %v360_v4 = vadd.f32 %v485_v0, %v352_v2 }
 0x48a   :  { %v359_v5 = vadd.f32 %v485_v0, %v351_v3 }
 0x48b   :  { %v362_v7 = vmax.f32 %v360_v4, 0.0 }
 0x48c   :  { %v361_v6 = vmax.f32 %v359_v5, 0.0 }
 0x48e   :  { %643 = vmatprep.mubr.f32.mxu0 %v361_v6 }
 0x48f   :  { %644 = vmatmul.mubr.f32.vlgmr.msra.gmra.mrb[2].mxu0 %v362_v7 }
 0x562   :  { %v645_v9 = vpop.f32.mrb[2].mxu0 }
 0x563   :  { %v458_v10 = vadd.f32 %v645_v9, %v486_v8  ;;  %v452_v11 = vpop.f32.mrb[3].mxu0 }
 0x564   :  { %v453_v12 = vadd.f32 %v486_v8, %v452_v11 }
 0x565   :  { %462 = vst [vmem:[#allocation10 + $0x8] sm:$0xff] %v458_v10 }
 0x566   :  { %461 = vst [vmem:[#allocation10] sm:$0xff] %v453_v12 }
 0x567   :  { %856 = shalt.err (!%p853_p8)
}
 0x568   :  { %s857_s8 = scalar_lea.hbm %s1056_s9, 256 }
 0x569   :  { %p858_p9 = scmp.ne.s32.totalorder %s1056_s9, %s857_s8  ;;  %p861_p10 = scmp.lt.u32.totalorder %s857_s8, %s1056_s9 }
 0x56b   :  { %p863_p11 = pnand %p861_p10, %p858_p9 }
 0x56d   :  { %866 = shalt.err (!%p863_p11)
}
 0x56e   :  { %474 = dma.vmem_to_hbm [thread:$0]  %s469_s25, 256, %s1056_s9, [#allocation4], %s877_s21, %s877_s21, %s878_s22  }
 0x56f   :  { %873 = dma.done.wait [#allocation4], 256  }
 0x570   :  { %874 = vsyncadd [#allocation4], 4294967040 }
 0x571   :  { %478 = vsyncpa [#allocation3], 1 }
 0x572   :  { %479 = vsyncpa [#allocation6], 1 }
 0x573   :  { %480 = vsyncpa [#allocation9], 1 }
 0x574   :  { %481 = vsyncpa [#allocation4], 1 }

</bundles_post_ra>
